<compile_context>
chip_gen: v5e
topology: v5e:2x2
jax: 0.10.0
libtpu: 0.0.40
codegen_flags: <defaults>
</compile_context>

<pallas_src>
import jax
import jax.numpy as jnp
from jax.experimental import pallas as pl
from jax.experimental.pallas import tpu as pltpu


def _identity_kernel(x_ref, o_ref):
    # Straight VMEM tile copy (the "forward" of the abstract base class).
    o_ref[...] = x_ref[...]


_MAX_LANES = 1024                      # lane-dense last dim: large multiple of 128
_TILE_BYTES_BUDGET = 2 * 1024 * 1024   # ~2 MiB/tile -> ~8 MiB live with double buffering


def _pick_lanes(total):
    """Largest multiple of 128 (<= _MAX_LANES) that exactly divides `total`."""
    for k in range(_MAX_LANES // 128, 0, -1):
        lanes = k * 128
        if total % lanes == 0:
            return lanes
    return None


def _pick_tile_rows(rows, lanes, itemsize):
    """Largest sublane-aligned divisor of `rows` within the VMEM tile budget."""
    # Sublane packing multiple: f32 -> 8, bf16 -> 16, int8 -> 32.
    sub = 8 * max(1, 4 // max(itemsize, 1))
    max_rows = max(1, _TILE_BYTES_BUDGET // (lanes * itemsize))
    cap = min(rows, max_rows)
    d = (cap // sub) * sub
    while d >= sub:
        if rows % d == 0:
            return d
        d -= sub
    if rows <= max_rows:
        return rows  # full-extent block along rows is always legal
    # TODO(synk): pathological row counts (huge primes) fall back to one big block.
    return rows


def layer_forward(x):
    """Identity forward of the abstract `Layer`, run through a Pallas kernel.

    x: any-rank array (example: NCHW [B, C, H, W]).
    Returns an array identical to x (same shape, same dtype).
    """
    orig_shape = x.shape
    orig_dtype = x.dtype
    total = int(x.size)

    if total == 0:
        # Guard: empty tensor has nothing to copy (avoids zero-sized grid math).
        return x

    itemsize = jnp.dtype(orig_dtype).itemsize
    lanes = _pick_lanes(total)

    if lanes is None:
        # Total size not divisible by 128: copy as a single full-extent block
        # (block_shape == full array dims is always legal).  No pad/slice pass.
        x2d = x.reshape(1, total)
        out2d = pl.pallas_call(
            _identity_kernel,
            out_shape=jax.ShapeDtypeStruct((1, total), orig_dtype),
        )(x2d)
        return out2d.reshape(orig_shape)

    rows = total // lanes
    tile_rows = _pick_tile_rows(rows, lanes, itemsize)
    grid = (rows // tile_rows,)

    # Reshape is a metadata-only change for a contiguous row-major array.
    x2d = x.reshape(rows, lanes)

    out2d = pl.pallas_call(
        _identity_kernel,
        out_shape=jax.ShapeDtypeStruct((rows, lanes), orig_dtype),
        grid_spec=pltpu.PrefetchScalarGridSpec(
            num_scalar_prefetch=0,
            grid=grid,
            in_specs=[pl.BlockSpec((tile_rows, lanes), lambda i: (i, 0))],
            out_specs=pl.BlockSpec((tile_rows, lanes), lambda i: (i, 0)),
        ),
        compiler_params=pltpu.CompilerParams(
            dimension_semantics=("parallel",),
        ),
    )(x2d)
    return out2d.reshape(orig_shape)


if __name__ == "__main__":
    key = jax.random.PRNGKey(0)

    # Small NCHW input consistent with the module's (abstract) forward(x).
    # Total size 2*4*16*16 = 2048 -> lane-dense slab [2, 1024], single tile.
    x = jax.random.normal(key, (2, 4, 16, 16), dtype=jnp.float32)
    y = jax.block_until_ready(layer_forward(x))
    assert y.shape == x.shape and y.dtype == x.dtype
    assert bool(jnp.allclose(y, x))

    # Also exercise the fallback path (size not divisible by 128).
    x_odd = jax.random.normal(key, (3, 5, 7), dtype=jnp.float32)
    y_odd = jax.block_until_ready(layer_forward(x_odd))
    assert y_odd.shape == x_odd.shape and bool(jnp.allclose(y_odd, x_odd))

    print("KERNEL_OK")
</pallas_src>

<mosaic_0001>
module attributes {stable_mosaic.version = 11 : i64} {
  func.func @_identity_kernel(%arg0: i32, %arg1: memref<2x1024xf32, #tpu.memory_space<vmem>>, %arg2: memref<2x1024xf32, #tpu.memory_space<vmem>>) attributes {dimension_semantics = [#tpu.dimension_semantics<parallel>], iteration_bounds = array<i64: 1>, scalar_prefetch = 0 : i64, scratch_operands = 0 : i64, tpu.core_type = #tpu.core_type<tc>, window_params = [{transform_indices = @transform_0, window_bounds = array<i64: 2, 1024>}, {transform_indices = @transform_1, window_bounds = array<i64: 2, 1024>}]} {
    %c0 = arith.constant 0 : index
    %c0_0 = arith.constant 0 : index
    %0 = vector.load %arg1[%c0, %c0_0] : memref<2x1024xf32, #tpu.memory_space<vmem>>, vector<2x1024xf32>
    %c0_1 = arith.constant 0 : index
    %c0_2 = arith.constant 0 : index
    %1 = vector.load %arg2[%c0_1, %c0_2] : memref<2x1024xf32, #tpu.memory_space<vmem>>, vector<2x1024xf32>
    tpu.vector_store %arg2[%c0_1, %c0_2], %0 {strides = array<i32>} : memref<2x1024xf32, #tpu.memory_space<vmem>>, vector<2x1024xf32>,
    return
  }
  func.func @transform_0(%arg0: i32) -> (i32, i32) {
    %c0_i32 = arith.constant 0 : i32
    %c0_i32_0 = arith.constant 0 : i32
    return %arg0, %c0_i32 : i32, i32
  }
  func.func @transform_1(%arg0: i32) -> (i32, i32) {
    %c0_i32 = arith.constant 0 : i32
    %c0_i32_0 = arith.constant 0 : i32
    return %arg0, %c0_i32 : i32, i32
  }
}

</mosaic_0001>

<bundles_post_ra>
// kernel: tpu_custom_call.1
= control target key start
LH: loop header
LB: loop body
LE: loop exit
PB: predicated region body
PF: predicated region fallthrough
CT: control target
= control target key end

     0   :  { %6 = vsyncpa [#allocation3], 0  ;;  %s116_s0 = inlined_call_operand.hbm [shape: f32[2,1024], index: 0, kind: input, shape index: {}]   ;;  %s117_s1 = inlined_call_operand.hbm [shape: f32[2,1024], index: 1, kind: output, shape index: {}]  }
   0x1   :  { %7 = vsyncpa [#allocation4], 0  ;;  %s13_s8 = sshll.u32 %s116_s0, 4  ;;  %s98_s9 = smov [#allocation2]   ;;  %s14_s8 = int_to_ptr.hbm [resolvable:$true] %s13_s8 }
   0x2   :  { %s15_s10 = sshll.u32 %s98_s9, 4  ;;  %s16_s10 = int_to_ptr.vmem [resolvable:$true] %s15_s10 }
   0x3   :  { %18 = dma.hbm_to_vmem [thread:$0]  %s14_s8, 256, %s16_s10, [#allocation3]  }
   0x4   :  { %94 = dma.done.wait [#allocation3], 256  }
   0x5   :  { %95 = vsyncadd [#allocation3], 4294967040  ;;  %s99_s11 = smov [#allocation5]   ;;  %s34_s15 = sshll.u32 %s117_s1, 4  ;;  %v23_v0 = vld [vmem:[#allocation2] sm:$0xff]  ;;  %v24_v1 = vld [vmem:[#allocation2 + $0x8] sm:$0xff]  ;;  %s35_s15 = int_to_ptr.hbm [resolvable:$true] %s34_s15 }
   0x6   :  { %s32_s12 = sshll.u32 %s99_s11, 4  ;;  %25 = vst [vmem:[#allocation5] sm:$0xff] %v23_v0  ;;  %s33_s12 = int_to_ptr.vmem [resolvable:$true] %s32_s12 }
   0x7   :  { %26 = vst [vmem:[#allocation5 + $0x8] sm:$0xff] %v24_v1 }
   0x8   :  { %37 = dma.vmem_to_hbm [thread:$0]  %s33_s12, 256, %s35_s15, [#allocation4]  }
   0x9   :  { %96 = dma.done.wait [#allocation4], 256  }
   0xa   :  { %97 = vsyncadd [#allocation4], 4294967040 }
   0xb   :  { %42 = vsyncpa [#allocation3], 1 }
   0xc   :  { %43 = vsyncpa [#allocation4], 1 }

</bundles_post_ra>
